<compile_context>
chip_gen: v6e
topology: v6e:2x2x1
jax: 0.10.0
libtpu: 0.0.40
codegen_flags: <defaults>
</compile_context>

<pallas_src>
import functools
import math

import jax
import jax.numpy as jnp
from jax.experimental import pallas as pl
from jax.experimental.pallas import tpu as pltpu


def _lora_kernel(x_ref, a_ref, b_ref, o_ref, *, compute_dtype):
    # x_ref: (tm, in) in the caller's dtype -> cast on the VPU (free under DMA)
    # a_ref: (in, r)        compute dtype
    # b_ref: (r, out_pad)   compute dtype, scaling pre-folded
    x = x_ref[...].astype(compute_dtype)
    xa = jnp.dot(x, a_ref[...], preferred_element_type=jnp.float32)       # (tm, r)
    y = jnp.dot(xa.astype(compute_dtype), b_ref[...],
                preferred_element_type=jnp.float32)                       # (tm, out_pad)
    o_ref[...] = y.astype(o_ref.dtype)


def _round_up(x, m):
    return ((x + m - 1) // m) * m


def _vmem_limit_bytes():
    """Generation-aware scoped-VMEM limit (leave headroom for compiler scratch)."""
    cap = None
    try:
        cap = getattr(pltpu.get_tpu_info(), "vmem_capacity_bytes", None)
    except Exception:
        cap = None
    if not cap:
        cap = 64 * 1024 * 1024          # conservative: smallest per-TC VMEM (v7x)
    # ~3/4 of physical, capped: ~48 MiB on v7x (64 MiB), ~96 MiB on v5e/v6e (128 MiB)
    return min((cap * 3) // 4, 100 * 1024 * 1024)


def _pick_tm(M, in_features, out_padded, r, x_itemsize, out_itemsize,
             w_itemsize, tile_budget_bytes):
    """Row-tile size from a VMEM budget with per-buffer dtype accounting."""
    m8 = _round_up(max(M, 1), 8)
    # Resident weights are double-buffered by the default pipeline.
    weight_bytes = 2 * (in_features * r + r * out_padded) * w_itemsize
    avail = max(tile_budget_bytes - weight_bytes, 1 << 20)
    # Double-buffered x tile (caller dtype) + double-buffered out tile (out dtype).
    per_row_vmem = 2 * (in_features * x_itemsize + out_padded * out_itemsize)
    tm = avail // max(per_row_vmem, 1)
    tm = max(8, min(1024, (tm // 8) * 8))
    tm = min(tm, m8)
    # Only split when the data is large enough that pipeline overlap beats the
    # ~0.35us/step overhead (never "for cores" on 1-TC chips); when splitting,
    # target >= 4 steps so each v7x TensorCore gets >= 2 steps of overlap.
    hbm_bytes = M * (in_features * x_itemsize + out_padded * out_itemsize)
    if hbm_bytes >= (4 << 20) and pl.cdiv(M, tm) < 4:
        tm = max(8, _round_up(pl.cdiv(M, 4), 8))
    return min(tm, m8)


def lora_block(x, lora_a_w, lora_b_w, scaling, *, tm=None,
               compute_dtype=jnp.bfloat16, out_dtype=None,
               vmem_limit_bytes=None):
    """x: [..., in_features] -> [..., out_features]  (LoraBlock.forward)."""
    *lead, in_features = x.shape
    r, in_features_a = lora_a_w.shape
    out_features, r_b = lora_b_w.shape
    assert in_features == in_features_a and r == r_b
    out_dtype = x.dtype if out_dtype is None else out_dtype

    M = 1
    for d in lead:
        M *= d

    # Weight-side layout plumbing (one-time; weights are tiny):
    #   A^T           -> (in, r)
    #   scaling * B^T -> (r, out_padded); out padded to a multiple of 128 so
    #   the output block's last dim is lane-dense (full-width vst / writeback).
    out_padded = _round_up(out_features, 128)
    a_t = lora_a_w.T.astype(compute_dtype)
    b_t = (lora_b_w * jnp.asarray(scaling, lora_b_w.dtype)).T.astype(compute_dtype)
    if out_padded != out_features:
        b_t = jnp.pad(b_t, ((0, 0), (0, out_padded - out_features)))

    # x stays in its own dtype; the kernel casts it (no extra HBM pass).
    x2d = x.reshape(M, in_features)

    if vmem_limit_bytes is None:
        vmem_limit_bytes = _vmem_limit_bytes()
    if tm is None:
        tm = _pick_tm(M, in_features, out_padded, r,
                      jnp.dtype(x.dtype).itemsize,
                      jnp.dtype(out_dtype).itemsize,
                      jnp.dtype(compute_dtype).itemsize,
                      tile_budget_bytes=vmem_limit_bytes - (4 << 20))
    tm = max(8, (tm // 8) * 8)
    grid_m = pl.cdiv(M, tm)

    out2d = pl.pallas_call(
        functools.partial(_lora_kernel, compute_dtype=compute_dtype),
        out_shape=jax.ShapeDtypeStruct((M, out_padded), out_dtype),
        grid_spec=pltpu.PrefetchScalarGridSpec(
            num_scalar_prefetch=0,
            grid=(grid_m,),
            in_specs=[
                pl.BlockSpec((tm, in_features), lambda i: (i, 0)),   # x row tile
                pl.BlockSpec((in_features, r), lambda i: (0, 0)),    # A^T (resident)
                pl.BlockSpec((r, out_padded), lambda i: (0, 0)),     # scaled B^T (resident)
            ],
            out_specs=pl.BlockSpec((tm, out_padded), lambda i: (i, 0)),
        ),
        compiler_params=pltpu.CompilerParams(
            dimension_semantics=("parallel",),
            vmem_limit_bytes=vmem_limit_bytes,
        ),
    )(x2d, a_t, b_t)

    if out_padded != out_features:
        out2d = out2d[:, :out_features]   # tiny for non-128 outs; no-op otherwise
    return out2d.reshape(*lead, out_features)


def lora_block_reference_f32(x, lora_a_w, lora_b_w, scaling):
    """Exact module semantics in f32 (PyTorch reference path)."""
    xa = jnp.einsum("...i,ri->...r", x, lora_a_w)
    y = jnp.einsum("...r,or->...o", xa, lora_b_w)
    return y * scaling


def lora_block_reference_bf16_path(x, lora_a_w, lora_b_w, scaling,
                                   compute_dtype=jnp.bfloat16, out_dtype=None):
    """Same dtype path as the kernel (bf16 compute, f32 accumulate)."""
    out_dtype = x.dtype if out_dtype is None else out_dtype
    xc = x.reshape(-1, x.shape[-1]).astype(compute_dtype)
    a_t = lora_a_w.T.astype(compute_dtype)
    b_t = (lora_b_w * jnp.asarray(scaling, lora_b_w.dtype)).T.astype(compute_dtype)
    xa = jnp.dot(xc, a_t, preferred_element_type=jnp.float32)
    y = jnp.dot(xa.astype(compute_dtype), b_t, preferred_element_type=jnp.float32)
    return y.reshape(*x.shape[:-1], lora_b_w.shape[0]).astype(out_dtype)


if __name__ == "__main__":
    # Module config (small, deterministic).
    in_features = 32
    out_features = 32
    r = 8
    alpha = 16
    dropout = 0.0          # -> nn.Identity
    scaling = alpha / r

    key = jax.random.PRNGKey(0)
    kx, ka, kb, kx2 = jax.random.split(key, 4)

    # reset_lora_parameters():
    #   lora_A: kaiming_uniform_(a=sqrt(5)) -> U(-1/sqrt(fan_in), 1/sqrt(fan_in))
    bound_a = 1.0 / math.sqrt(in_features)
    lora_a_w = jax.random.uniform(
        ka, (r, in_features), dtype=jnp.float32, minval=-bound_a, maxval=bound_a)
    #   lora_B: zeros_ in the module (output identically zero); use small
    #   deterministic values of the same shape for a meaningful numerical check.
    lora_b_w = 0.02 * jax.random.normal(kb, (out_features, r), dtype=jnp.float32)

    # --- case 1: auto tiling, M a multiple of the sublane width --------------
    batch, seq = 2, 8
    x = jax.random.normal(kx, (batch, seq, in_features), dtype=jnp.float32)
    out = jax.block_until_ready(lora_block(x, lora_a_w, lora_b_w, scaling))
    assert out.shape == (batch, seq, out_features)

    ref_same_path = lora_block_reference_bf16_path(x, lora_a_w, lora_b_w, scaling)
    assert jnp.allclose(out, ref_same_path, atol=1e-4, rtol=1e-4), \
        "mismatch vs same-dtype-path reference"
    ref_f32 = lora_block_reference_f32(x, lora_a_w, lora_b_w, scaling)
    assert jnp.allclose(out, ref_f32, atol=5e-3, rtol=5e-2), \
        "mismatch vs f32 module reference"

    # --- case 2: ragged M (partial last block -> masked OOB store) + bf16 out
    batch2, seq2 = 2, 7           # M = 14, tm = 8 -> last block overhangs by 2 rows
    x2 = jax.random.normal(kx2, (batch2, seq2, in_features), dtype=jnp.float32)
    out2 = jax.block_until_ready(
        lora_block(x2, lora_a_w, lora_b_w, scaling, tm=8, out_dtype=jnp.bfloat16))
    assert out2.shape == (batch2, seq2, out_features)
    assert out2.dtype == jnp.bfloat16

    ref2 = lora_block_reference_bf16_path(x2, lora_a_w, lora_b_w, scaling,
                                          out_dtype=jnp.bfloat16)
    assert jnp.allclose(out2.astype(jnp.float32), ref2.astype(jnp.float32),
                        atol=2e-3, rtol=2e-2), \
        "mismatch vs same-dtype-path reference (ragged / bf16 out)"

    print("KERNEL_OK")
</pallas_src>

<mosaic_0001>
module attributes {stable_mosaic.version = 11 : i64} {
  func.func @_lora_kernel(%arg0: i32, %arg1: memref<16x32xf32, #tpu.memory_space<vmem>>, %arg2: memref<32x8xbf16, #tpu.memory_space<vmem>>, %arg3: memref<8x128xbf16, #tpu.memory_space<vmem>>, %arg4: memref<16x128xf32, #tpu.memory_space<vmem>>) attributes {dimension_semantics = [#tpu.dimension_semantics<parallel>], iteration_bounds = array<i64: 1>, scalar_prefetch = 0 : i64, scratch_operands = 0 : i64, tpu.core_type = #tpu.core_type<tc>, window_params = [{transform_indices = @transform_0, window_bounds = array<i64: 16, 32>}, {pipeline_mode = #tpu.pipeline_mode<synchronous>, transform_indices = @transform_1, window_bounds = array<i64: 32, 8>}, {pipeline_mode = #tpu.pipeline_mode<synchronous>, transform_indices = @transform_2, window_bounds = array<i64: 8, 128>}, {transform_indices = @transform_3, window_bounds = array<i64: 16, 128>}]} {
    %c0 = arith.constant 0 : index
    %c0_0 = arith.constant 0 : index
    %0 = vector.load %arg1[%c0, %c0_0] : memref<16x32xf32, #tpu.memory_space<vmem>>, vector<16x32xf32>
    %1 = arith.truncf %0 : vector<16x32xf32> to vector<16x32xbf16>
    %c0_1 = arith.constant 0 : index
    %c0_2 = arith.constant 0 : index
    %2 = vector.load %arg2[%c0_1, %c0_2] : memref<32x8xbf16, #tpu.memory_space<vmem>>, vector<32x8xbf16>
    %cst = arith.constant dense<0.000000e+00> : vector<16x8xf32>
    %3 = tpu.matmul %1, %2, %cst {dimension_numbers = #tpu.dot_dimension_numbers<[1], [0], [0], [1], [0, 0, 1, 1], [], []>} : vector<16x32xbf16>, vector<32x8xbf16>, vector<16x8xf32> -> vector<16x8xf32>
    %4 = arith.truncf %3 : vector<16x8xf32> to vector<16x8xbf16>
    %c0_3 = arith.constant 0 : index
    %c0_4 = arith.constant 0 : index
    %5 = vector.load %arg3[%c0_3, %c0_4] : memref<8x128xbf16, #tpu.memory_space<vmem>>, vector<8x128xbf16>
    %cst_5 = arith.constant dense<0.000000e+00> : vector<16x128xf32>
    %6 = tpu.matmul %4, %5, %cst_5 {dimension_numbers = #tpu.dot_dimension_numbers<[1], [0], [0], [1], [0, 0, 1, 1], [], []>} : vector<16x8xbf16>, vector<8x128xbf16>, vector<16x128xf32> -> vector<16x128xf32>
    %c0_6 = arith.constant 0 : index
    %c0_7 = arith.constant 0 : index
    %7 = vector.load %arg4[%c0_6, %c0_7] : memref<16x128xf32, #tpu.memory_space<vmem>>, vector<16x128xf32>
    tpu.vector_store %arg4[%c0_6, %c0_7], %6 {strides = array<i32>} : memref<16x128xf32, #tpu.memory_space<vmem>>, vector<16x128xf32>,
    return
  }
  func.func @transform_0(%arg0: i32) -> (i32, i32) {
    %c0_i32 = arith.constant 0 : i32
    %c0_i32_0 = arith.constant 0 : i32
    return %arg0, %c0_i32 : i32, i32
  }
  func.func @transform_1(%arg0: i32) -> (i32, i32) {
    %c0_i32 = arith.constant 0 : i32
    %c0_i32_0 = arith.constant 0 : i32
    %c0_i32_1 = arith.constant 0 : i32
    return %c0_i32, %c0_i32_0 : i32, i32
  }
  func.func @transform_2(%arg0: i32) -> (i32, i32) {
    %c0_i32 = arith.constant 0 : i32
    %c0_i32_0 = arith.constant 0 : i32
    %c0_i32_1 = arith.constant 0 : i32
    return %c0_i32, %c0_i32_0 : i32, i32
  }
  func.func @transform_3(%arg0: i32) -> (i32, i32) {
    %c0_i32 = arith.constant 0 : i32
    %c0_i32_0 = arith.constant 0 : i32
    return %arg0, %c0_i32 : i32, i32
  }
}

</mosaic_0001>

<bundles_post_ra>
// kernel: tpu_custom_call.1
= control target key start
LH: loop header
LB: loop body
LE: loop exit
PB: predicated region body
PF: predicated region fallthrough
CT: control target
= control target key end

     0   :  { %v201_v1 = vmov 0.0   ;;  %vm202_vm0 = vmmov 0   ;;  %s244_s0 = inlined_call_operand.vmem [shape: f32[16,32], index: 0, kind: input, shape index: {}]   ;;  %s245_s1 = inlined_call_operand.vmem [shape: bf16[32,8], index: 1, kind: input, shape index: {}]   ;;  %s246_s2 = inlined_call_operand.vmem [shape: bf16[8,128], index: 2, kind: input, shape index: {}]   ;;  %s247_s3 = inlined_call_operand.hbm [shape: f32[16,128], index: 3, kind: output, shape index: {}]  }
   0x1   :  { %v177_v0 = vld [vmem:[%s245_s1 + $0x8] sm:$0xff]   ;;  %158 = vmatprep.subr.bf16.mxu0 %v201_v1  ;;  %v178_v2 = vld [vmem:[%s245_s1] sm:$0xff]   ;;  %166 = vmatprep.subr.bf16.mxu1 %v201_v1 }
   0x2   :  { %159 = vmatpush3.bf16.msra.mxu0 %v177_v0  ;;  %162 = vmatprep.mubr.msk.bf16.mxu0 %vm202_vm0, %v201_v1  ;;  %v16_v3 = vld [vmem:[%s244_s0] sm:$0xff]  ;;  %v17_v4 = vld [vmem:[%s244_s0 + $0x8] sm:$0xff] }
   0x3   :  { %8 = vsyncpa [#allocation3], 0  ;;  %160 = vmatprep.subr.bf16.mxu0 %v201_v1  ;;  %168 = vmatprep.mubr.msk.bf16.mxu1 %vm202_vm0, %v201_v1  ;;  %v18_v5 = vpack.c.bf16 %v17_v4, %v16_v3  ;;  %vm35_vm1 = vcmask 261120   ;;  %v81_v6 = vld [vmem:[%s246_s2] sm:$0xf]  ;;  %vm86_vm2 = vcmask 1043456  }
   0x4   :  { %v88_v7 = vsel %vm86_vm2, %v81_v6, 0  ;;  %vm82_vm3 = vcmask 64512   ;;  %s203_s0 = smov [#allocation2]  }
   0x5   :  { %167 = vmatpush3.bf16.msra.mxu1 %v88_v7  ;;  %s138_s21 = sshll.u32 %s203_s0, 4  ;;  %s139_s21 = int_to_ptr.vmem [resolvable:$true] %s138_s21 }
   0x6   :  { %161 = vmatpush3.bf16.msra.mxu0 %v178_v2  ;;  %s179_s2 = scalar_lea.vmem %s139_s21, 256  ;;  %p184_p1 = scmp.lt.s32.totalorder %s139_s21, %s139_s21 }
   0x7   :  { %p180_p0 = scmp.ne.s32.totalorder %s139_s21, %s179_s2  ;;  %p185_p2 = scmp.lt.s32.totalorder %s179_s2, %s179_s2 }
   0x9   :  { %163 = vmatmul.mubr.msk.bf16.vlgmr.msra.gmra.mxu0 %vm35_vm1, %v18_v5  ;;  %p186_p3 = por %p185_p2, %p184_p1 }
   0xb   :  { %p187_p4 = pnand %p186_p3, %p180_p0 }
  0xc9   :  { %v73_v8 = vpop.f32.mrf.mxu0 }
  0xcb   :  { %v164_v9 = vpop.f32.mrf.mxu0 }
  0xcd   :  { %v76_v10 = vpop.f32.mrf.mxu0 }
  0xce   :  { %v80_v11 = vpack.c.bf16 %v76_v10, %v73_v8 }
  0xcf   :  { %v165_v12 = vpop.f32.mrf.mxu0 }
  0xd0   :  { %169 = vmatmul.mubr.msk.bf16.vlgmr.msra.gmra.mxu1 %vm82_vm3, %v80_v11 }
 0x190   :  { %v124_v13 = vpop.f32.mrf.mxu1 }
 0x191   :  { %131 = vst [vmem:[#allocation2] sm:$0xff] %v124_v13 }
 0x192   :  { %v170_v14 = vpop.f32.mrf.mxu1 }
 0x194   :  { %v127_v15 = vpop.f32.mrf.mxu1 }
 0x195   :  { %132 = vst [vmem:[#allocation2 + $0x8] sm:$0xff] %v127_v15 }
 0x196   :  { %v171_v16 = vpop.f32.mrf.mxu1 }
 0x197   :  { %190 = shalt.err (!%p187_p4)
}
 0x198   :  { %s204_s22 = smov 128   ;;  %s205_s23 = smov 8  }
 0x199   :  { %144 = dma.vmem_to_hbm [thread:$0]  %s139_s21, 256, %s247_s3, [#allocation3], %s204_s22, %s204_s22, %s205_s23  }
 0x19a   :  { %199 = dma.done.wait [#allocation3], 256  }
 0x19b   :  { %200 = vsyncadd [#allocation3], 4294967040 }
 0x19c   :  { %148 = vsyncpa [#allocation3], 1 }

</bundles_post_ra>
